<compile_context>
chip_gen: v6e
topology: v6e:2x2x1
jax: 0.10.0
libtpu: 0.0.40
codegen_flags: <defaults>
</compile_context>

<pallas_src>
import functools

import numpy as np
import jax
import jax.numpy as jnp
from jax.experimental import pallas as pl
from jax.experimental.pallas import tpu as pltpu

_EPS = 1e-5  # nn.InstanceNorm2d default eps (affine=False, biased variance)


# -----------------------------------------------------------------------------
# Host-side constant construction (lru_cached: runs once per shape at trace time)
# -----------------------------------------------------------------------------
def _upsample_matrix_1d(n_in: int, scale: int) -> np.ndarray:
    """1-D bilinear upsample matrix matching torch Upsample(align_corners=False)."""
    # TODO(synk): boundary handling mirrors torch's area_pixel_compute_source_index
    # (align_corners=False); a direct torch cross-check cannot run in this
    # self-contained script (no torch dependency allowed).
    n_out = n_in * scale
    i = np.arange(n_out, dtype=np.float64)
    src = np.clip((i + 0.5) / scale - 0.5, 0.0, None)     # torch clamps src to >= 0
    i0 = np.minimum(np.floor(src).astype(np.int64), n_in - 1)
    i1 = np.minimum(i0 + 1, n_in - 1)
    lam = (src - i0).astype(np.float32)
    U = np.zeros((n_out, n_in), dtype=np.float32)
    U[np.arange(n_out), i0] += 1.0 - lam
    U[np.arange(n_out), i1] += lam
    return U


@functools.lru_cache(maxsize=None)
def _upsample_w_T(w: int, scale: int) -> np.ndarray:
    """UW^T, shape (W, W*scale)."""
    return np.ascontiguousarray(_upsample_matrix_1d(w, scale).T)


@functools.lru_cache(maxsize=None)
def _upsample_kron_T(h: int, w: int, scale: int) -> np.ndarray:
    """kron(UH, UW)^T, shape (H*W, (H*s)*(W*s)), so that z = y @ Ukron^T."""
    UH = _upsample_matrix_1d(h, scale)
    UW = _upsample_matrix_1d(w, scale)
    return np.ascontiguousarray(np.kron(UH, UW).T)


# -----------------------------------------------------------------------------
# Hardware-aware sizing helpers
# -----------------------------------------------------------------------------
def _vmem_budget_bytes() -> int:
    """~75% of physical VMEM: ~48 MiB on v7x (64 MiB), ~96 MiB on v5e/v6e (128 MiB)."""
    phys = 64 * 1024 * 1024                       # conservative default (v7x-sized)
    try:
        phys = int(getattr(pltpu.get_tpu_info(), "vmem_capacity_bytes", phys))
    except Exception:
        pass
    return (phys * 3) // 4


def _pick_channel_block(c_out, fixed_bytes, per_channel_bytes, budget, n_batch):
    """Largest channel block whose per-step working set fits the VMEM budget.

    Legal blocks respect the (8,128) sublane rule for (c_blk, ...) blocks:
    c_blk is a multiple of 8 or the full C_out, and must divide C_out.
    """
    cands = sorted({d for d in range(8, c_out + 1, 8) if c_out % d == 0} | {c_out})
    max_c = max(1, (budget - fixed_bytes) // max(per_channel_bytes, 1))
    valid = [d for d in cands if d <= max_c]
    if not valid:
        valid = [cands[0]]          # smallest legal block; nothing smaller expressible
    c_blk = max(valid)
    # v7x has 2 TensorCores: make sure single-sample calls still yield >= 2 parallel
    # grid steps (the extra ~0.35us grid step is negligible on 1-TC chips).
    if n_batch == 1 and c_blk == c_out:
        smaller = [d for d in valid if d < c_out]
        if smaller:
            c_blk = max(smaller)
    return c_blk


# -----------------------------------------------------------------------------
# Kernel bodies
# -----------------------------------------------------------------------------
def _instance_norm_skip_store(z, skip_ref, o_ref):
    """InstanceNorm2d(affine=False, biased var, eps=1e-5) + skip add, all f32 math."""
    mean = jnp.mean(z, axis=-1, keepdims=True)                 # (c_blk, 1)
    zc = z - mean
    var = jnp.mean(zc * zc, axis=-1, keepdims=True)            # two-pass (torch parity)
    zn = zc * jax.lax.rsqrt(var + _EPS)
    o_ref[0] = (zn + skip_ref[0].astype(jnp.float32)).astype(o_ref.dtype)


def _make_dense_kernel(compute_dtype):
    def kernel(x_ref, w_ref, ukt_ref, skip_ref, o_ref):
        # x_ref:    (1, C_in, S)    spatial flattened on the lane axis
        # w_ref:    (c_blk, C_in)   1x1-conv weight rows for this channel block
        # ukt_ref:  (S, S2)         kron(UH, UW)^T in compute_dtype
        # skip_ref: (1, c_blk, S2)  lane-dense
        # o_ref:    (1, c_blk, S2)  lane-dense
        x = x_ref[0].astype(compute_dtype)
        w = w_ref[...].astype(compute_dtype)
        # 1) 1x1 conv first (commutes with the upsample; scale^2 fewer conv FLOPs).
        y = jnp.dot(w, x, preferred_element_type=jnp.float32)            # (c_blk, S)
        # 2) Bilinear upsample as ONE dense MXU matmul (K = S); lane-dense result,
        #    no in-kernel reshapes at all.
        z = jnp.dot(y.astype(compute_dtype), ukt_ref[...],
                    preferred_element_type=jnp.float32)                   # (c_blk, S2)
        # 3) InstanceNorm + skip add + store.
        _instance_norm_skip_store(z, skip_ref, o_ref)
    return kernel


def _make_separable_kernel(c_blk, H, W, scale, compute_dtype):
    # Large-spatial fallback: kron(UH, UW) would not fit VMEM.
    SH, SW = H * scale, W * scale
    S2 = SH * SW

    def kernel(x_ref, w_ref, uwt_ref, skip_ref, o_ref):
        x = x_ref[0].astype(compute_dtype)                                # (C_in, S)
        w = w_ref[...].astype(compute_dtype)
        y = jnp.dot(w, x, preferred_element_type=jnp.float32)             # (c_blk, S)

        # H-axis upsample as a 2-tap VPU stencil in the flat spatial domain: the
        # h +/- 1 neighbour is a lane shift of +/- W, so only 2-D lane-axis
        # concatenates are needed (no K=H batched matmuls, no UH broadcasts).
        prev = jnp.concatenate([y[:, :W], y[:, :-W]], axis=1)             # clamp h=0
        nxt = jnp.concatenate([y[:, W:], y[:, -W:]], axis=1)              # clamp h=H-1
        phases = []
        for r in range(scale):                                            # static loop
            off = (r + 0.5) / scale - 0.5
            if off < 0.0:
                lam = float(off + 1.0)
                ph = (1.0 - lam) * prev + lam * y
            else:
                lam = float(off)
                ph = (1.0 - lam) * y + lam * nxt
            phases.append(ph.reshape(c_blk, H, 1, W))
        t = jnp.concatenate(phases, axis=2)                               # (c_blk, H, scale, W)

        # W-axis upsample as ONE 2-D matmul with the channel*row batch folded into M.
        t2 = t.reshape(c_blk * SH, W).astype(compute_dtype)
        z = jnp.dot(t2, uwt_ref[...], preferred_element_type=jnp.float32)  # (c_blk*SH, SW)
        z = z.reshape(c_blk, S2)                                            # lane-dense

        _instance_norm_skip_store(z, skip_ref, o_ref)
    return kernel


# -----------------------------------------------------------------------------
# Public wrapper
# -----------------------------------------------------------------------------
@functools.partial(jax.jit, static_argnames=("scale_factor", "compute_dtype"))
def upsampling_add(x, x_skip, conv_weight, scale_factor=2, compute_dtype=jnp.bfloat16):
    """Fused UpsamplingAdd forward.

    x:           (N, C_in, H, W)
    x_skip:      (N, C_out, H*scale, W*scale)
    conv_weight: (C_out, C_in, 1, 1)
    Returns (N, C_out, H*scale, W*scale) in x_skip.dtype.  compute_dtype controls the
    MXU operand dtype (bf16 default); accumulation and InstanceNorm stay f32.
    """
    scale = int(scale_factor)
    assert scale == scale_factor and scale >= 1
    N, C_in, H, W = x.shape
    _, C_out, SH, SW = x_skip.shape
    assert SH == H * scale and SW == W * scale, "x_skip spatial dims mismatch"
    assert conv_weight.shape == (C_out, C_in, 1, 1)

    S, S2 = H * W, SH * SW
    x_bytes = jnp.dtype(x.dtype).itemsize
    skip_bytes = jnp.dtype(x_skip.dtype).itemsize
    out_bytes = skip_bytes
    cd_bytes = jnp.dtype(compute_dtype).itemsize

    budget = _vmem_budget_bytes()

    # Path choice: dense kron upsample whenever its matrix comfortably fits VMEM
    # (per review: S up to ~1K at scale 2).  Otherwise separable fallback.
    ukron_bytes = S * S2 * cd_bytes
    use_dense = (2 * ukron_bytes) <= min(16 * 1024 * 1024, budget // 3)
    u_np = _upsample_kron_T(H, W, scale) if use_dense else _upsample_w_T(W, scale)
    u_operand = jnp.asarray(u_np, dtype=compute_dtype)
    u_bytes = int(u_operand.size) * cd_bytes

    # VMEM-aware channel blocking.  Grid-invariant / batch-invariant operands are
    # conservatively counted as double-buffered (we deliberately do not rely on
    # pl.Buffered(1) to stay on the most battle-tested pipelining path).
    fixed_bytes = (2 * C_in * S * max(x_bytes, cd_bytes)        # x block (reused per n)
                   + 2 * u_bytes                                # upsample operand
                   + 2 * C_out * C_in * 4                       # conv weights
                   + (2 << 20))                                 # compiler scratch headroom
    per_channel = S2 * (2 * skip_bytes + 2 * out_bytes + 4 * 4) + C_in * 4
    c_blk = _pick_channel_block(C_out, fixed_bytes, per_channel, budget, N)
    n_cblk = C_out // c_blk

    w_mat = conv_weight[:, :, 0, 0]                     # (C_out, C_in)
    # Free reshapes only (trailing-dim merges) — NCHW kept, spatial on the lane axis.
    x_l = x.reshape(N, C_in, S)
    skip_l = x_skip.reshape(N, C_out, S2)

    if use_dense:
        kernel = _make_dense_kernel(compute_dtype)
        u_spec = pl.BlockSpec((S, S2), lambda n, c: (0, 0))
        up_flops = 2 * N * C_out * S * S2
    else:
        kernel = _make_separable_kernel(c_blk, H, W, scale, compute_dtype)
        u_spec = pl.BlockSpec((W, SW), lambda n, c: (0, 0))
        up_flops = 4 * N * C_out * S + 2 * N * C_out * SH * W * SW

    cost = pl.CostEstimate(
        flops=int(2 * N * C_out * C_in * S + up_flops + 10 * N * C_out * S2),
        transcendentals=int(N * C_out),
        bytes_accessed=int(N * C_in * S * x_bytes
                           + 2 * N * C_out * S2 * skip_bytes
                           + C_out * C_in * 4 + u_bytes),
    )

    out_l = pl.pallas_call(
        kernel,
        out_shape=jax.ShapeDtypeStruct((N, C_out, S2), x_skip.dtype),
        grid_spec=pltpu.PrefetchScalarGridSpec(
            num_scalar_prefetch=0,
            grid=(N, n_cblk),                       # batch x channel-block, both parallel
            in_specs=[
                pl.BlockSpec((1, C_in, S), lambda n, c: (n, 0, 0)),     # x (reused per n)
                pl.BlockSpec((c_blk, C_in), lambda n, c: (c, 0)),       # 1x1-conv weights
                u_spec,                                                 # upsample operand
                pl.BlockSpec((1, c_blk, S2), lambda n, c: (n, c, 0)),   # skip, lane-dense
            ],
            out_specs=pl.BlockSpec((1, c_blk, S2), lambda n, c: (n, c, 0)),
        ),
        compiler_params=pltpu.CompilerParams(
            dimension_semantics=("parallel", "parallel"),
            vmem_limit_bytes=int(budget),
        ),
        cost_estimate=cost,
    )(x_l, w_mat, u_operand, skip_l)

    return out_l.reshape(N, C_out, SH, SW)


# -----------------------------------------------------------------------------
# Pure-JAX reference (mirrors the torch module's op order, HIGHEST precision)
# -----------------------------------------------------------------------------
def _reference(x, x_skip, conv_weight, scale_factor=2):
    N, C_in, H, W = x.shape
    UH = jnp.asarray(_upsample_matrix_1d(H, int(scale_factor)))
    UW = jnp.asarray(_upsample_matrix_1d(W, int(scale_factor)))
    hi = jax.lax.Precision.HIGHEST
    up = jnp.einsum("ah,nchw,bw->ncab", UH, x, UW, precision=hi)    # bilinear upsample
    w = conv_weight[:, :, 0, 0]
    y = jnp.einsum("oc,ncab->noab", w, up, precision=hi)            # 1x1 conv, no bias
    mean = jnp.mean(y, axis=(2, 3), keepdims=True)
    var = jnp.mean(jnp.square(y - mean), axis=(2, 3), keepdims=True)
    return (y - mean) * jax.lax.rsqrt(var + _EPS) + x_skip


def _run_case(N, C_in, C_out, H, W, scale, compute_dtype, rtol, atol):
    key = jax.random.PRNGKey(0)
    kx, ks, kw = jax.random.split(key, 3)
    x = jax.random.normal(kx, (N, C_in, H, W), dtype=jnp.float32)
    skip = jax.random.normal(ks, (N, C_out, H * scale, W * scale), dtype=jnp.float32)
    w = jax.random.normal(kw, (C_out, C_in, 1, 1), dtype=jnp.float32) * 0.1
    out = jax.block_until_ready(
        upsampling_add(x, skip, w, scale_factor=scale, compute_dtype=compute_dtype))
    assert out.shape == (N, C_out, H * scale, W * scale)
    ref = jax.block_until_ready(_reference(x, skip, w, scale))
    np.testing.assert_allclose(np.asarray(out), np.asarray(ref), rtol=rtol, atol=atol)


if __name__ == "__main__":
    # NOTE: these small shapes exercise the primary dense-kron path; the large-spatial
    # separable fallback is selected automatically when kron(UH,UW) exceeds the VMEM
    # budget.  Tolerances stay conservative because MXU matmuls may be lowered as
    # multi-pass bf16; InstanceNorm / accumulation math is f32 either way.
    #
    # 1) f32 matmul operands, N=2, C_out=4 (single channel block per sample).
    _run_case(2, 8, 4, 16, 16, 2, jnp.float32, 2e-2, 2e-2)
    # 2) Default bf16 matmul operands; N=1, C_out=16 also exercises channel blocking
    #    (grid = (1, 2) parallel steps -> both v7x TensorCores get work).
    _run_case(1, 16, 16, 16, 16, 2, jnp.bfloat16, 3e-2, 3e-2)
    print("KERNEL_OK")
</pallas_src>

<mosaic_0001>
module attributes {stable_mosaic.version = 11 : i64} {
  func.func @kernel(%arg0: i32, %arg1: i32, %arg2: memref<1x8x256xf32, #tpu.memory_space<vmem>>, %arg3: memref<4x8xf32, #tpu.memory_space<vmem>>, %arg4: memref<256x1024xf32, #tpu.memory_space<vmem>>, %arg5: memref<1x4x1024xf32, #tpu.memory_space<vmem>>, %arg6: memref<1x4x1024xf32, #tpu.memory_space<vmem>>) attributes {dimension_semantics = [#tpu.dimension_semantics<parallel>, #tpu.dimension_semantics<parallel>], iteration_bounds = array<i64: 2, 1>, scalar_prefetch = 0 : i64, scratch_operands = 0 : i64, tpu.core_type = #tpu.core_type<tc>, window_params = [{transform_indices = @transform_0, window_bounds = array<i64: 1, 8, 256>}, {transform_indices = @transform_1, window_bounds = array<i64: 4, 8>}, {pipeline_mode = #tpu.pipeline_mode<synchronous>, transform_indices = @transform_2, window_bounds = array<i64: 256, 1024>}, {transform_indices = @transform_3, window_bounds = array<i64: 1, 4, 1024>}, {transform_indices = @transform_4, window_bounds = array<i64: 1, 4, 1024>}]} {
    %c0 = arith.constant 0 : index
    %c0_0 = arith.constant 0 : index
    %c0_1 = arith.constant 0 : index
    %0 = vector.load %arg2[%c0, %c0_0, %c0_1] : memref<1x8x256xf32, #tpu.memory_space<vmem>>, vector<1x8x256xf32>
    %1 = vector.shape_cast %0 : vector<1x8x256xf32> to vector<8x256xf32>
    %c0_2 = arith.constant 0 : index
    %c0_3 = arith.constant 0 : index
    %2 = vector.load %arg3[%c0_2, %c0_3] : memref<4x8xf32, #tpu.memory_space<vmem>>, vector<4x8xf32>
    %cst = arith.constant dense<0.000000e+00> : vector<4x256xf32>
    %3 = tpu.matmul %2, %1, %cst {dimension_numbers = #tpu.dot_dimension_numbers<[1], [0], [0], [1], [0, 0, 1, 1], [], []>} : vector<4x8xf32>, vector<8x256xf32>, vector<4x256xf32> -> vector<4x256xf32>
    %c0_4 = arith.constant 0 : index
    %c0_5 = arith.constant 0 : index
    %4 = vector.load %arg4[%c0_4, %c0_5] : memref<256x1024xf32, #tpu.memory_space<vmem>>, vector<256x1024xf32>
    %cst_6 = arith.constant dense<0.000000e+00> : vector<4x1024xf32>
    %5 = tpu.matmul %3, %4, %cst_6 {dimension_numbers = #tpu.dot_dimension_numbers<[1], [0], [0], [1], [0, 0, 1, 1], [], []>} : vector<4x256xf32>, vector<256x1024xf32>, vector<4x1024xf32> -> vector<4x1024xf32>
    %cst_7 = arith.constant dense<0.000000e+00> : vector<4xf32>
    %6 = vector.multi_reduction <add>, %5, %cst_7 [1] : vector<4x1024xf32> to vector<4xf32>
    %7 = vector.shape_cast %6 : vector<4xf32> to vector<4x1xf32>
    %cst_8 = arith.constant 1.024000e+03 : f32
    %8 = vector.broadcast %cst_8 : f32 to vector<4x1xf32>
    %9 = arith.divf %7, %8 : vector<4x1xf32>
    %10 = vector.broadcast %9 : vector<4x1xf32> to vector<4x1024xf32>
    %11 = arith.subf %5, %10 : vector<4x1024xf32>
    %12 = arith.mulf %11, %11 : vector<4x1024xf32>
    %cst_9 = arith.constant dense<0.000000e+00> : vector<4xf32>
    %13 = vector.multi_reduction <add>, %12, %cst_9 [1] : vector<4x1024xf32> to vector<4xf32>
    %14 = vector.shape_cast %13 : vector<4xf32> to vector<4x1xf32>
    %cst_10 = arith.constant 1.024000e+03 : f32
    %15 = vector.broadcast %cst_10 : f32 to vector<4x1xf32>
    %16 = arith.divf %14, %15 : vector<4x1xf32>
    %cst_11 = arith.constant 9.99999974E-6 : f32
    %17 = vector.broadcast %cst_11 : f32 to vector<4x1xf32>
    %18 = arith.addf %16, %17 : vector<4x1xf32>
    %19 = math.rsqrt %18 : vector<4x1xf32>
    %20 = vector.broadcast %19 : vector<4x1xf32> to vector<4x1024xf32>
    %21 = arith.mulf %11, %20 : vector<4x1024xf32>
    %c0_12 = arith.constant 0 : index
    %c0_13 = arith.constant 0 : index
    %c0_14 = arith.constant 0 : index
    %22 = vector.load %arg5[%c0_12, %c0_13, %c0_14] : memref<1x4x1024xf32, #tpu.memory_space<vmem>>, vector<1x4x1024xf32>
    %23 = vector.shape_cast %22 : vector<1x4x1024xf32> to vector<4x1024xf32>
    %24 = arith.addf %21, %23 : vector<4x1024xf32>
    %c0_15 = arith.constant 0 : index
    %c0_16 = arith.constant 0 : index
    %c0_17 = arith.constant 0 : index
    %25 = vector.load %arg6[%c0_15, %c0_16, %c0_17] : memref<1x4x1024xf32, #tpu.memory_space<vmem>>, vector<1x4x1024xf32>
    %26 = vector.shape_cast %25 : vector<1x4x1024xf32> to vector<4x1024xf32>
    %27 = vector.shape_cast %24 : vector<4x1024xf32> to vector<1x4x1024xf32>
    tpu.vector_store %arg6[%c0_15, %c0_16, %c0_17], %27 {strides = array<i32>} : memref<1x4x1024xf32, #tpu.memory_space<vmem>>, vector<1x4x1024xf32>,
    return
  }
  func.func @transform_0(%arg0: i32, %arg1: i32) -> (i32, i32, i32) {
    %c0_i32 = arith.constant 0 : i32
    %c0_i32_0 = arith.constant 0 : i32
    %c0_i32_1 = arith.constant 0 : i32
    return %arg0, %c0_i32, %c0_i32_0 : i32, i32, i32
  }
  func.func @transform_1(%arg0: i32, %arg1: i32) -> (i32, i32) {
    %c0_i32 = arith.constant 0 : i32
    %c0_i32_0 = arith.constant 0 : i32
    return %arg1, %c0_i32 : i32, i32
  }
  func.func @transform_2(%arg0: i32, %arg1: i32) -> (i32, i32) {
    %c0_i32 = arith.constant 0 : i32
    %c0_i32_0 = arith.constant 0 : i32
    %c0_i32_1 = arith.constant 0 : i32
    return %c0_i32, %c0_i32_0 : i32, i32
  }
  func.func @transform_3(%arg0: i32, %arg1: i32) -> (i32, i32, i32) {
    %c0_i32 = arith.constant 0 : i32
    %c0_i32_0 = arith.constant 0 : i32
    return %arg0, %arg1, %c0_i32 : i32, i32, i32
  }
  func.func @transform_4(%arg0: i32, %arg1: i32) -> (i32, i32, i32) {
    %c0_i32 = arith.constant 0 : i32
    %c0_i32_0 = arith.constant 0 : i32
    return %arg0, %arg1, %c0_i32 : i32, i32, i32
  }
}

</mosaic_0001>

<bundles_post_ra>
// kernel: upsampling_add.1
= control target key start
LH: loop header
LB: loop body
LE: loop exit
PB: predicated region body
PF: predicated region fallthrough
CT: control target
= control target key end

     0   :  { %9 = vsyncpa [#allocation3], 0  ;;  %s1291_s15 = smov 0   ;;  %s1293_s16 = smov 0   ;;  %s1382_s0 = inlined_call_operand.vmem [shape: f32[2,8,256], index: 0, kind: input, shape index: {}]   ;;  %s1383_s1 = inlined_call_operand.vmem [shape: f32[4,8], index: 1, kind: input, shape index: {}]   ;;  %s1384_s2 = inlined_call_operand.hbm [shape: f32[256,1024], index: 2, kind: input, shape index: {}]   ;;  %s1385_s3 = inlined_call_operand.vmem [shape: f32[2,4,1024], index: 3, kind: input, shape index: {}]   ;;  %s1386_s4 = inlined_call_operand.vmem [shape: f32[2,4,1024], index: 4, kind: output, shape index: {}]  }
   0x1   :  { %s1295_s17 = smov 0  }
   0x2 LB: > { %s1144_s18 = sadd.s32 4294967295, %s1260_s17   ;;  %s27_s19 = sadd.s32 1, %s1256_s16  ;;  %s1260_s17 = sphi %s1295_s17, %s15_s17   ;;  %s1256_s16 = sphi %s1293_s16, %s1390_s16   ;;  %s1252_s15 = sphi %s1291_s15, %s1389_s15  }
   0x3   : > { %p29_p0 = scmp.ge.s32.totalorder %s27_s19, 2  ;;  %p1146_p1 = scmp.ge.s32.totalorder %s1260_s17, 1 }
   0x4   : > { %p161_p2 = scmp.lt.s32.totalorder %s1260_s17, 3  ;;  %p1316_p4 = scmp.eq.s32.totalorder %s1144_s18, 0 }
   0x5   : > { %s1392_s19 = smov (%p29_p0, %s27_s19), 0  ;;  %s1262_s22 = smov [#allocation2]  }
   0x6   : > { %p1312_p3 = pnand %p1146_p1, %p161_p2  ;;  %s180_s23 = sshll.u32 %s1262_s22, 4  ;;  %s181_s23 = int_to_ptr.vmem [resolvable:$true] %s180_s23 }
   0x7   : > { %s1219_s24 = scalar_lea.vmem %s181_s23, 32768  ;;  %p1227_p11 = scmp.lt.s32.totalorder %s181_s23, %s181_s23 }
   0x8   : > { %p1168_p5 = pneg %p1312_p3  ;;  %p1220_p8 = scmp.ne.s32.totalorder %s181_s23, %s1219_s24 }
   0x9   : > { %p1228_p12 = scmp.lt.s32.totalorder %s1219_s24, %s1219_s24 }
   0xa   : > { %p1169_p6 = pnand %p1316_p4, %p1168_p5 }
   0xb   : > { %p1229_p13 = por %p1228_p12, %p1227_p11 }
   0xc   : > { %p1210_p7 = pneg %p1169_p6 }
   0xe   : > { %p1222_p9 = pnand %p1220_p8, %p1210_p7 }
  0x10   : > { %p1223_p10 = pneg %p1222_p9 }
  0x12   : > { %p1230_p0 = pnand %p1229_p13, %p1223_p10 }
  0x14   : > { %1233 = shalt.err (!%p1230_p0)
}
  0x15   : > { %s1263_s25 = smov 1024   ;;  %s1264_s26 = smov 64  }
  0x16   : > { %1171 = dma.hbm_to_vmem [thread:$0]  (!%p1169_p6), %s1384_s2, 32768, %s181_s23, [#allocation3], %s1263_s25, %s1263_s25, %s1264_s26  }
  0x17   : > { %216 = sbr.rel (%p1312_p3) target bundleno = 823 (0x337), region = 36 }
  0x1c   : > { %1247 = dma.done.wait (%p1316_p4), [#allocation3], 32768  }
  0x1d   : > { %1249 = vsyncadd (%p1316_p4), [#allocation3], 4294934528  ;;  %p259_p1 = scmp.lt.s32.totalorder %s1252_s15, 1  ;;  %v1265_v0 = vmov 0.0   ;;  %vm289_vm0 = vcmask 64512   ;;  %v485_v4 = vld [vmem:[#allocation2 + $0x3c8] sm:$0xff] }
  0x1e   : > { %357 = vmatprep.mubr.f32.mxu0 %v1265_v0  ;;  %v288_v3 = vld [vmem:[%s1383_s1] sm:$0xf]  ;;  %v487_v5 = vld [vmem:[#allocation2 + $0x3d8] sm:$0xff]  ;;  %620 = vmatprep.subr.mxu1 %v485_v4  ;;  %v486_v7 = vld [vmem:[#allocation2 + $0x3d0] sm:$0xff]  ;;  %vm904_vm1 = vcmask 1043456  }
  0x1f   : > { %s1394_s15 = smov (!%p259_p1, %s1252_s15), 1  ;;  %v484_v6 = vld [vmem:[#allocation2 + $0x3c0] sm:$0xff]  ;;  %v477_v8 = vld [vmem:[#allocation2 + $0x388] sm:$0xff]  ;;  %v479_v9 = vld [vmem:[#allocation2 + $0x398] sm:$0xff] }
  0x20   : > { %s1161_s29 = sshll.u32 %s1394_s15, 4  ;;  %621 = vmatpush1.msra.mxu1 %v484_v6  ;;  %v476_v10 = vld [vmem:[#allocation2 + $0x380] sm:$0xff]  ;;  %v478_v11 = vld [vmem:[#allocation2 + $0x390] sm:$0xff]  ;;  %v469_v12 = vld [vmem:[#allocation2 + $0x348] sm:$0xff]  ;;  %s1162_s9 = sshll.u32 %s1394_s15, 5 }
  0x21   : > { %s263_s6 = scalar_lea.vmem %s1382_s0, %s1161_s29  ;;  %622 = vmatprep.subr.mxu1 %v477_v8  ;;  %v471_v13 = vld [vmem:[#allocation2 + $0x358] sm:$0xff]  ;;  %v468_v14 = vld [vmem:[#allocation2 + $0x340] sm:$0xff]  ;;  %v470_v15 = vld [vmem:[#allocation2 + $0x350] sm:$0xff]  ;;  %s276_s12 = scalar_lea.vmem %s1385_s3, %s1162_s9 }
  0x22   : > { %v287_v1 = vld [vmem:[%s263_s6 + $0x8] sm:$0xff]  ;;  %v286_v2 = vld [vmem:[%s263_s6] sm:$0xff]  ;;  %623 = vmatpush1.msra.mxu1 %v476_v10  ;;  %v463_v17 = vld [vmem:[#allocation2 + $0x318] sm:$0xff]  ;;  %s285_s15 = scalar_lea.vmem %s1386_s4, %s1162_s9 }
  0x23   : > { %323 = vmatprep.subr.mxu0 %v287_v1  ;;  %v461_v16 = vld [vmem:[#allocation2 + $0x308] sm:$0xff]  ;;  %624 = vmatprep.subr.mxu1 %v469_v12  ;;  %v460_v18 = vld [vmem:[#allocation2 + $0x300] sm:$0xff]  ;;  %v462_v19 = vld [vmem:[#allocation2 + $0x310] sm:$0xff] }
  0x24   : > { %324 = vmatpush1.msra.mxu0 %v286_v2  ;;  %625 = vmatpush1.msra.mxu1 %v468_v14  ;;  %v453_v20 = vld [vmem:[#allocation2 + $0x2c8] sm:$0xff]  ;;  %v455_v21 = vld [vmem:[#allocation2 + $0x2d8] sm:$0xff]  ;;  %v452_v22 = vld [vmem:[#allocation2 + $0x2c0] sm:$0xff] }
  0x25   : > { %1158 = vmatmul.mubr.msk.f32.vlgmr.msra.gmra.mxu0 %vm289_vm0, %v288_v3  ;;  %691 = vmatprep.subr.mxu0 %v487_v5  ;;  %v454_v23 = vld [vmem:[#allocation2 + $0x2d0] sm:$0xff]  ;;  %v445_v24 = vld [vmem:[#allocation2 + $0x288] sm:$0xff]  ;;  %v447_v25 = vld [vmem:[#allocation2 + $0x298] sm:$0xff] }
  0x26   : > { %692 = vmatpush1.msra.mxu0 %v486_v7  ;;  %626 = vmatprep.subr.mxu1 %v461_v16  ;;  %v444_v26 = vld [vmem:[#allocation2 + $0x280] sm:$0xff]  ;;  %v446_v27 = vld [vmem:[#allocation2 + $0x290] sm:$0xff]  ;;  %v437_v28 = vld [vmem:[#allocation2 + $0x248] sm:$0xff] }
  0x27   : > { %693 = vmatprep.subr.mxu0 %v479_v9  ;;  %627 = vmatpush1.msra.mxu1 %v460_v18  ;;  %v439_v29 = vld [vmem:[#allocation2 + $0x258] sm:$0xff]  ;;  %v436_v30 = vld [vmem:[#allocation2 + $0x240] sm:$0xff]  ;;  %v438_v31 = vld [vmem:[#allocation2 + $0x250] sm:$0xff] }
  0x28   : > { %694 = vmatpush1.msra.mxu0 %v478_v11  ;;  %628 = vmatprep.subr.mxu1 %v453_v20  ;;  %v429_v32 = vld [vmem:[#allocation2 + $0x208] sm:$0xff]  ;;  %v431_v33 = vld [vmem:[#allocation2 + $0x218] sm:$0xff]  ;;  %v428_v34 = vld [vmem:[#allocation2 + $0x200] sm:$0xff] }
  0x29   : > { %695 = vmatprep.subr.mxu0 %v471_v13  ;;  %629 = vmatpush1.msra.mxu1 %v452_v22  ;;  %v430_v35 = vld [vmem:[#allocation2 + $0x210] sm:$0xff]  ;;  %v421_v36 = vld [vmem:[#allocation2 + $0x1c8] sm:$0xff]  ;;  %v423_v37 = vld [vmem:[#allocation2 + $0x1d8] sm:$0xff] }
  0x2a   : > { %696 = vmatpush1.msra.mxu0 %v470_v15  ;;  %630 = vmatprep.subr.mxu1 %v445_v24  ;;  %v420_v38 = vld [vmem:[#allocation2 + $0x1c0] sm:$0xff]  ;;  %v422_v39 = vld [vmem:[#allocation2 + $0x1d0] sm:$0xff]  ;;  %v413_v40 = vld [vmem:[#allocation2 + $0x188] sm:$0xff] }
  0x2b   : > { %697 = vmatprep.subr.mxu0 %v463_v17  ;;  %631 = vmatpush1.msra.mxu1 %v444_v26  ;;  %v415_v41 = vld [vmem:[#allocation2 + $0x198] sm:$0xff]  ;;  %v412_v42 = vld [vmem:[#allocation2 + $0x180] sm:$0xff]  ;;  %v414_v43 = vld [vmem:[#allocation2 + $0x190] sm:$0xff] }
  0x2c   : > { %698 = vmatpush1.msra.mxu0 %v462_v19  ;;  %632 = vmatprep.subr.mxu1 %v437_v28  ;;  %v405_v44 = vld [vmem:[#allocation2 + $0x148] sm:$0xff]  ;;  %v407_v45 = vld [vmem:[#allocation2 + $0x158] sm:$0xff]  ;;  %v404_v46 = vld [vmem:[#allocation2 + $0x140] sm:$0xff] }
  0x2d   : > { %699 = vmatprep.subr.mxu0 %v455_v21  ;;  %633 = vmatpush1.msra.mxu1 %v436_v30  ;;  %v406_v47 = vld [vmem:[#allocation2 + $0x150] sm:$0xff]  ;;  %v397_v48 = vld [vmem:[#allocation2 + $0x108] sm:$0xff]  ;;  %v399_v49 = vld [vmem:[#allocation2 + $0x118] sm:$0xff] }
  0x2e   : > { %700 = vmatpush1.msra.mxu0 %v454_v23  ;;  %634 = vmatprep.subr.mxu1 %v429_v32  ;;  %v396_v50 = vld [vmem:[#allocation2 + $0x100] sm:$0xff]  ;;  %v398_v51 = vld [vmem:[#allocation2 + $0x110] sm:$0xff]  ;;  %v389_v52 = vld [vmem:[#allocation2 + $0xc8] sm:$0xff] }
  0x2f   : > { %701 = vmatprep.subr.mxu0 %v447_v25  ;;  %635 = vmatpush1.msra.mxu1 %v428_v34  ;;  %v391_v53 = vld [vmem:[#allocation2 + $0xd8] sm:$0xff]  ;;  %v388_v54 = vld [vmem:[#allocation2 + $0xc0] sm:$0xff]  ;;  %v390_v55 = vld [vmem:[#allocation2 + $0xd0] sm:$0xff] }
  0x30   : > { %702 = vmatpush1.msra.mxu0 %v446_v27  ;;  %636 = vmatprep.subr.mxu1 %v421_v36  ;;  %v381_v56 = vld [vmem:[#allocation2 + $0x88] sm:$0xff]  ;;  %v383_v57 = vld [vmem:[#allocation2 + $0x98] sm:$0xff]  ;;  %v380_v58 = vld [vmem:[#allocation2 + $0x80] sm:$0xff] }
  0x31   : > { %703 = vmatprep.subr.mxu0 %v439_v29  ;;  %637 = vmatpush1.msra.mxu1 %v420_v38  ;;  %v382_v59 = vld [vmem:[#allocation2 + $0x90] sm:$0xff]  ;;  %v373_v60 = vld [vmem:[#allocation2 + $0x48] sm:$0xff]  ;;  %v375_v61 = vld [vmem:[#allocation2 + $0x58] sm:$0xff] }
  0x32   : > { %704 = vmatpush1.msra.mxu0 %v438_v31  ;;  %638 = vmatprep.subr.mxu1 %v413_v40  ;;  %v372_v62 = vld [vmem:[#allocation2 + $0x40] sm:$0xff]  ;;  %v374_v63 = vld [vmem:[#allocation2 + $0x50] sm:$0xff]  ;;  %v365_v0 = vld [vmem:[#allocation2 + $0x8] sm:$0xff] }
  0x33   : > { %705 = vmatprep.subr.mxu0 %v431_v33  ;;  %639 = vmatpush1.msra.mxu1 %v412_v42  ;;  %v367_v1 = vld [vmem:[#allocation2 + $0x18] sm:$0xff]  ;;  %v364_v2 = vld [vmem:[#allocation2] sm:$0xff]  ;;  %v366_v3 = vld [vmem:[#allocation2 + $0x10] sm:$0xff] }
  0x34   : > { %706 = vmatpush1.msra.mxu0 %v430_v35  ;;  %640 = vmatprep.subr.mxu1 %v405_v44  ;;  %v613_v4 = vld [vmem:[#allocation2 + $0x7c8] sm:$0xff]  ;;  %v615_v5 = vld [vmem:[#allocation2 + $0x7d8] sm:$0xff]  ;;  %v612_v6 = vld [vmem:[#allocation2 + $0x7c0] sm:$0xff] }
  0x35   : > { %707 = vmatprep.subr.mxu0 %v423_v37  ;;  %641 = vmatpush1.msra.mxu1 %v404_v46  ;;  %v614_v7 = vld [vmem:[#allocation2 + $0x7d0] sm:$0xff]  ;;  %v605_v8 = vld [vmem:[#allocation2 + $0x788] sm:$0xff]  ;;  %v607_v9 = vld [vmem:[#allocation2 + $0x798] sm:$0xff] }
  0x36   : > { %708 = vmatpush1.msra.mxu0 %v422_v39  ;;  %642 = vmatprep.subr.mxu1 %v397_v48  ;;  %v604_v10 = vld [vmem:[#allocation2 + $0x780] sm:$0xff]  ;;  %v606_v11 = vld [vmem:[#allocation2 + $0x790] sm:$0xff]  ;;  %v597_v12 = vld [vmem:[#allocation2 + $0x748] sm:$0xff] }
  0x37   : > { %709 = vmatprep.subr.mxu0 %v415_v41  ;;  %643 = vmatpush1.msra.mxu1 %v396_v50  ;;  %v599_v13 = vld [vmem:[#allocation2 + $0x758] sm:$0xff]  ;;  %v596_v14 = vld [vmem:[#allocation2 + $0x740] sm:$0xff]  ;;  %v598_v15 = vld [vmem:[#allocation2 + $0x750] sm:$0xff] }
  0x38   : > { %710 = vmatpush1.msra.mxu0 %v414_v43  ;;  %644 = vmatprep.subr.mxu1 %v389_v52  ;;  %v589_v16 = vld [vmem:[#allocation2 + $0x708] sm:$0xff]  ;;  %v591_v17 = vld [vmem:[#allocation2 + $0x718] sm:$0xff]  ;;  %v588_v18 = vld [vmem:[#allocation2 + $0x700] sm:$0xff] }
  0x39   : > { %711 = vmatprep.subr.mxu0 %v407_v45  ;;  %645 = vmatpush1.msra.mxu1 %v388_v54  ;;  %v590_v19 = vld [vmem:[#allocation2 + $0x710] sm:$0xff]  ;;  %v581_v20 = vld [vmem:[#allocation2 + $0x6c8] sm:$0xff]  ;;  %v583_v21 = vld [vmem:[#allocation2 + $0x6d8] sm:$0xff] }
  0x3a   : > { %712 = vmatpush1.msra.mxu0 %v406_v47  ;;  %646 = vmatprep.subr.mxu1 %v381_v56  ;;  %v580_v22 = vld [vmem:[#allocation2 + $0x6c0] sm:$0xff]  ;;  %v582_v23 = vld [vmem:[#allocation2 + $0x6d0] sm:$0xff]  ;;  %v573_v24 = vld [vmem:[#allocation2 + $0x688] sm:$0xff] }
  0x3b   : > { %713 = vmatprep.subr.mxu0 %v399_v49  ;;  %647 = vmatpush1.msra.mxu1 %v380_v58  ;;  %v575_v25 = vld [vmem:[#allocation2 + $0x698] sm:$0xff]  ;;  %v572_v26 = vld [vmem:[#allocation2 + $0x680] sm:$0xff]  ;;  %v574_v27 = vld [vmem:[#allocation2 + $0x690] sm:$0xff] }
  0x3c   : > { %714 = vmatpush1.msra.mxu0 %v398_v51  ;;  %648 = vmatprep.subr.mxu1 %v373_v60  ;;  %v565_v28 = vld [vmem:[#allocation2 + $0x648] sm:$0xff]  ;;  %v567_v29 = vld [vmem:[#allocation2 + $0x658] sm:$0xff]  ;;  %v564_v30 = vld [vmem:[#allocation2 + $0x640] sm:$0xff] }
  0x3d   : > { %715 = vmatprep.subr.mxu0 %v391_v53  ;;  %649 = vmatpush1.msra.mxu1 %v372_v62  ;;  %v566_v31 = vld [vmem:[#allocation2 + $0x650] sm:$0xff]  ;;  %v557_v32 = vld [vmem:[#allocation2 + $0x608] sm:$0xff]  ;;  %v559_v33 = vld [vmem:[#allocation2 + $0x618] sm:$0xff] }
  0x3e   : > { %716 = vmatpush1.msra.mxu0 %v390_v55  ;;  %650 = vmatprep.subr.mxu1 %v365_v0  ;;  %v556_v34 = vld [vmem:[#allocation2 + $0x600] sm:$0xff]  ;;  %v558_v35 = vld [vmem:[#allocation2 + $0x610] sm:$0xff]  ;;  %v549_v36 = vld [vmem:[#allocation2 + $0x5c8] sm:$0xff] }
  0x3f   : > { %717 = vmatprep.subr.mxu0 %v383_v57  ;;  %651 = vmatpush1.msra.mxu1 %v364_v2  ;;  %v551_v37 = vld [vmem:[#allocation2 + $0x5d8] sm:$0xff]  ;;  %v548_v38 = vld [vmem:[#allocation2 + $0x5c0] sm:$0xff]  ;;  %v550_v39 = vld [vmem:[#allocation2 + $0x5d0] sm:$0xff] }
  0x40   : > { %718 = vmatpush1.msra.mxu0 %v382_v59  ;;  %652 = vmatprep.subr.mxu1 %v613_v4  ;;  %v541_v40 = vld [vmem:[#allocation2 + $0x588] sm:$0xff]  ;;  %v543_v41 = vld [vmem:[#allocation2 + $0x598] sm:$0xff]  ;;  %v540_v42 = vld [vmem:[#allocation2 + $0x580] sm:$0xff] }
  0x41   : > { %719 = vmatprep.subr.mxu0 %v375_v61  ;;  %653 = vmatpush2.msra.mxu1 %v612_v6  ;;  %v542_v43 = vld [vmem:[#allocation2 + $0x590] sm:$0xff]  ;;  %v533_v44 = vld [vmem:[#allocation2 + $0x548] sm:$0xff]  ;;  %v535_v45 = vld [vmem:[#allocation2 + $0x558] sm:$0xff] }
  0x42   : > { %720 = vmatpush1.msra.mxu0 %v374_v63  ;;  %654 = vmatprep.subr.mxu1 %v605_v8  ;;  %v532_v46 = vld [vmem:[#allocation2 + $0x540] sm:$0xff]  ;;  %v534_v47 = vld [vmem:[#allocation2 + $0x550] sm:$0xff]  ;;  %v525_v48 = vld [vmem:[#allocation2 + $0x508] sm:$0xff] }
  0x43   : > { %721 = vmatprep.subr.mxu0 %v367_v1  ;;  %655 = vmatpush2.msra.mxu1 %v604_v10  ;;  %v527_v49 = vld [vmem:[#allocation2 + $0x518] sm:$0xff]  ;;  %v524_v50 = vld [vmem:[#allocation2 + $0x500] sm:$0xff]  ;;  %v526_v51 = vld [vmem:[#allocation2 + $0x510] sm:$0xff] }
  0x44   : > { %722 = vmatpush1.msra.mxu0 %v366_v3  ;;  %656 = vmatprep.subr.mxu1 %v597_v12  ;;  %v517_v52 = vld [vmem:[#allocation2 + $0x4c8] sm:$0xff]  ;;  %v519_v53 = vld [vmem:[#allocation2 + $0x4d8] sm:$0xff]  ;;  %v516_v54 = vld [vmem:[#allocation2 + $0x4c0] sm:$0xff] }
  0x45   : > { %723 = vmatprep.subr.mxu0 %v615_v5  ;;  %657 = vmatpush2.msra.mxu1 %v596_v14  ;;  %v518_v55 = vld [vmem:[#allocation2 + $0x4d0] sm:$0xff]  ;;  %v509_v56 = vld [vmem:[#allocation2 + $0x488] sm:$0xff]  ;;  %v511_v57 = vld [vmem:[#allocation2 + $0x498] sm:$0xff] }
  0x46   : > { %724 = vmatpush2.msra.mxu0 %v614_v7  ;;  %658 = vmatprep.subr.mxu1 %v589_v16  ;;  %v508_v58 = vld [vmem:[#allocation2 + $0x480] sm:$0xff]  ;;  %v510_v59 = vld [vmem:[#allocation2 + $0x490] sm:$0xff]  ;;  %v501_v60 = vld [vmem:[#allocation2 + $0x448] sm:$0xff] }
  0x47   : > { %725 = vmatprep.subr.mxu0 %v607_v9  ;;  %659 = vmatpush2.msra.mxu1 %v588_v18  ;;  %v503_v61 = vld [vmem:[#allocation2 + $0x458] sm:$0xff]  ;;  %v500_v62 = vld [vmem:[#allocation2 + $0x440] sm:$0xff]  ;;  %v502_v63 = vld [vmem:[#allocation2 + $0x450] sm:$0xff] }
  0x48   : > { %726 = vmatpush2.msra.mxu0 %v606_v11  ;;  %660 = vmatprep.subr.mxu1 %v581_v20  ;;  %v493_v0 = vld [vmem:[#allocation2 + $0x408] sm:$0xff]  ;;  %v495_v1 = vld [vmem:[#allocation2 + $0x418] sm:$0xff]  ;;  %v492_v2 = vld [vmem:[#allocation2 + $0x400] sm:$0xff] }
  0x49   : > { %727 = vmatprep.subr.mxu0 %v599_v13  ;;  %661 = vmatpush2.msra.mxu1 %v580_v22  ;;  %v494_v3 = vld [vmem:[#allocation2 + $0x410] sm:$0xff]  ;;  %v489_v4 = vld [vmem:[#allocation2 + $0x3e8] sm:$0xff]  ;;  %v491_v5 = vld [vmem:[#allocation2 + $0x3f8] sm:$0xff] }
  0x4a   : > { %728 = vmatpush2.msra.mxu0 %v598_v15  ;;  %662 = vmatprep.subr.mxu1 %v573_v24  ;;  %v488_v8 = vld [vmem:[#allocation2 + $0x3e0] sm:$0xff]  ;;  %v490_v9 = vld [vmem:[#allocation2 + $0x3f0] sm:$0xff]  ;;  %v481_v10 = vld [vmem:[#allocation2 + $0x3a8] sm:$0xff] }
  0x4b   : > { %729 = vmatprep.subr.mxu0 %v591_v17  ;;  %663 = vmatpush2.msra.mxu1 %v572_v26  ;;  %v483_v11 = vld [vmem:[#allocation2 + $0x3b8] sm:$0xff]  ;;  %v480_v12 = vld [vmem:[#allocation2 + $0x3a0] sm:$0xff]  ;;  %v482_v13 = vld [vmem:[#allocation2 + $0x3b0] sm:$0xff] }
  0x4c   : > { %730 = vmatpush2.msra.mxu0 %v590_v19  ;;  %664 = vmatprep.subr.mxu1 %v565_v28  ;;  %v473_v14 = vld [vmem:[#allocation2 + $0x368] sm:$0xff]  ;;  %v475_v15 = vld [vmem:[#allocation2 + $0x378] sm:$0xff]  ;;  %v472_v16 = vld [vmem:[#allocation2 + $0x360] sm:$0xff] }
  0x4d   : > { %731 = vmatprep.subr.mxu0 %v583_v21  ;;  %665 = vmatpush2.msra.mxu1 %v564_v30  ;;  %v474_v17 = vld [vmem:[#allocation2 + $0x370] sm:$0xff]  ;;  %v465_v18 = vld [vmem:[#allocation2 + $0x328] sm:$0xff]  ;;  %v467_v19 = vld [vmem:[#allocation2 + $0x338] sm:$0xff] }
  0x4e   : > { %732 = vmatpush2.msra.mxu0 %v582_v23  ;;  %666 = vmatprep.subr.mxu1 %v557_v32  ;;  %v464_v20 = vld [vmem:[#allocation2 + $0x320] sm:$0xff]  ;;  %v466_v21 = vld [vmem:[#allocation2 + $0x330] sm:$0xff]  ;;  %v457_v22 = vld [vmem:[#allocation2 + $0x2e8] sm:$0xff] }
  0x4f   : > { %733 = vmatprep.subr.mxu0 %v575_v25  ;;  %667 = vmatpush2.msra.mxu1 %v556_v34  ;;  %v459_v23 = vld [vmem:[#allocation2 + $0x2f8] sm:$0xff]  ;;  %v456_v24 = vld [vmem:[#allocation2 + $0x2e0] sm:$0xff]  ;;  %v458_v25 = vld [vmem:[#allocation2 + $0x2f0] sm:$0xff] }
  0x50   : > { %734 = vmatpush2.msra.mxu0 %v574_v27  ;;  %668 = vmatprep.subr.mxu1 %v549_v36  ;;  %v449_v26 = vld [vmem:[#allocation2 + $0x2a8] sm:$0xff]  ;;  %v451_v27 = vld [vmem:[#allocation2 + $0x2b8] sm:$0xff]  ;;  %v448_v28 = vld [vmem:[#allocation2 + $0x2a0] sm:$0xff] }
  0x51   : > { %735 = vmatprep.subr.mxu0 %v567_v29  ;;  %669 = vmatpush2.msra.mxu1 %v548_v38  ;;  %v450_v29 = vld [vmem:[#allocation2 + $0x2b0] sm:$0xff]  ;;  %v441_v30 = vld [vmem:[#allocation2 + $0x268] sm:$0xff]  ;;  %v440_v32 = vld [vmem:[#allocation2 + $0x260] sm:$0xff] }
  0x52   : > { %736 = vmatpush2.msra.mxu0 %v566_v31  ;;  %670 = vmatprep.subr.mxu1 %v541_v40  ;;  %v443_v31 = vld [vmem:[#allocation2 + $0x278] sm:$0xff]  ;;  %v433_v34 = vld [vmem:[#allocation2 + $0x228] sm:$0xff]  ;;  %v432_v36 = vld [vmem:[#allocation2 + $0x220] sm:$0xff] }
  0x53   : > { %737 = vmatprep.subr.mxu0 %v559_v33  ;;  %671 = vmatpush2.msra.mxu1 %v540_v42  ;;  %v442_v33 = vld [vmem:[#allocation2 + $0x270] sm:$0xff]  ;;  %v425_v38 = vld [vmem:[#allocation2 + $0x1e8] sm:$0xff]  ;;  %v424_v40 = vld [vmem:[#allocation2 + $0x1e0] sm:$0xff] }
  0x54   : > { %738 = vmatpush2.msra.mxu0 %v558_v35  ;;  %672 = vmatprep.subr.mxu1 %v533_v44  ;;  %v435_v35 = vld [vmem:[#allocation2 + $0x238] sm:$0xff]  ;;  %v417_v42 = vld [vmem:[#allocation2 + $0x1a8] sm:$0xff]  ;;  %v416_v44 = vld [vmem:[#allocation2 + $0x1a0] sm:$0xff] }
  0x55   : > { %739 = vmatprep.subr.mxu0 %v551_v37  ;;  %673 = vmatpush2.msra.mxu1 %v532_v46  ;;  %v434_v37 = vld [vmem:[#allocation2 + $0x230] sm:$0xff]  ;;  %v409_v46 = vld [vmem:[#allocation2 + $0x168] sm:$0xff] }
  0x56   : > { %740 = vmatpush2.msra.mxu0 %v550_v39  ;;  %674 = vmatprep.subr.mxu1 %v525_v48  ;;  %v427_v39 = vld [vmem:[#allocation2 + $0x1f8] sm:$0xff]  ;;  %v408_v48 = vld [vmem:[#allocation2 + $0x160] sm:$0xff] }
  0x57   : > { %741 = vmatprep.subr.mxu0 %v543_v41  ;;  %675 = vmatpush2.msra.mxu1 %v524_v50  ;;  %v426_v41 = vld [vmem:[#allocation2 + $0x1f0] sm:$0xff]  ;;  %v401_v50 = vld [vmem:[#allocation2 + $0x128] sm:$0xff] }
  0x58   : > { %742 = vmatpush2.msra.mxu0 %v542_v43  ;;  %676 = vmatprep.subr.mxu1 %v517_v52  ;;  %v419_v43 = vld [vmem:[#allocation2 + $0x1b8] sm:$0xff]  ;;  %v400_v52 = vld [vmem:[#allocation2 + $0x120] sm:$0xff] }
  0x59   : > { %743 = vmatprep.subr.mxu0 %v535_v45  ;;  %677 = vmatpush2.msra.mxu1 %v516_v54  ;;  %v418_v45 = vld [vmem:[#allocation2 + $0x1b0] sm:$0xff]  ;;  %v393_v54 = vld [vmem:[#allocation2 + $0xe8] sm:$0xff] }
  0x5a   : > { %744 = vmatpush2.msra.mxu0 %v534_v47  ;;  %678 = vmatprep.subr.mxu1 %v509_v56  ;;  %v411_v47 = vld [vmem:[#allocation2 + $0x178] sm:$0xff]  ;;  %v392_v56 = vld [vmem:[#allocation2 + $0xe0] sm:$0xff] }
  0x5b   : > { %745 = vmatprep.subr.mxu0 %v527_v49  ;;  %679 = vmatpush2.msra.mxu1 %v508_v58  ;;  %v410_v49 = vld [vmem:[#allocation2 + $0x170] sm:$0xff]  ;;  %v385_v58 = vld [vmem:[#allocation2 + $0xa8] sm:$0xff] }
  0x5c   : > { %746 = vmatpush2.msra.mxu0 %v526_v51  ;;  %680 = vmatprep.subr.mxu1 %v501_v60  ;;  %v403_v51 = vld [vmem:[#allocation2 + $0x138] sm:$0xff]  ;;  %v384_v60 = vld [vmem:[#allocation2 + $0xa0] sm:$0xff] }
  0x5d   : > { %747 = vmatprep.subr.mxu0 %v519_v53  ;;  %681 = vmatpush2.msra.mxu1 %v500_v62  ;;  %v402_v53 = vld [vmem:[#allocation2 + $0x130] sm:$0xff]  ;;  %v377_v62 = vld [vmem:[#allocation2 + $0x68] sm:$0xff] }
  0x5e   : > { %748 = vmatpush2.msra.mxu0 %v518_v55  ;;  %682 = vmatprep.subr.mxu1 %v493_v0  ;;  %v395_v55 = vld [vmem:[#allocation2 + $0xf8] sm:$0xff]  ;;  %v376_v0 = vld [vmem:[#allocation2 + $0x60] sm:$0xff] }
  0x5f   : > { %749 = vmatprep.subr.mxu0 %v511_v57  ;;  %683 = vmatpush2.msra.mxu1 %v492_v2  ;;  %v394_v57 = vld [vmem:[#allocation2 + $0xf0] sm:$0xff]  ;;  %v369_v2 = vld [vmem:[#allocation2 + $0x28] sm:$0xff] }
  0x60   : > { %750 = vmatpush2.msra.mxu0 %v510_v59  ;;  %762 = vmatprep.subr.mxu1 %v489_v4  ;;  %v387_v59 = vld [vmem:[#allocation2 + $0xb8] sm:$0xff]  ;;  %v368_v4 = vld [vmem:[#allocation2 + $0x20] sm:$0xff] }
  0x61   : > { %751 = vmatprep.subr.mxu0 %v503_v61  ;;  %v386_v61 = vld [vmem:[#allocation2 + $0xb0] sm:$0xff] }
  0x62   : > { %752 = vmatpush2.msra.mxu0 %v502_v63  ;;  %v379_v63 = vld [vmem:[#allocation2 + $0x78] sm:$0xff] }
  0x63   : > { %753 = vmatprep.subr.mxu0 %v495_v1  ;;  %v378_v1 = vld [vmem:[#allocation2 + $0x70] sm:$0xff] }
  0x64   : > { %754 = vmatpush2.msra.mxu0 %v494_v3  ;;  %v371_v3 = vld [vmem:[#allocation2 + $0x38] sm:$0xff] }
  0x65   : > { %833 = vmatprep.subr.mxu0 %v491_v5  ;;  %v370_v5 = vld [vmem:[#allocation2 + $0x30] sm:$0xff] }
  0xe5   : > { %v1344_v6 = vpop.f32.mrf.mxu0 }
  0xe7   : > { %v361_v7 = vpop.f32.mrf.mxu0 }
  0xe8   : > { %684 = vmatprep.mubr.f32.mxu1 %v361_v7  ;;  %755 = vmatprep.mubr.f32.mxu0 %v361_v7 }
  0xe9   : > { %685 = vmatmul.mubr.f32.vlgmr.msra.gmra.mxu1 %v1344_v6  ;;  %756 = vmatmul.mubr.f32.vlgmr.msra.gmra.mxu0 %v1344_v6 }
  0xea   : > { %763 = vmatpush1.msra.mxu1 %v488_v8  ;;  %834 = vmatpush1.msra.mxu0 %v490_v9  ;;  %v619_v8 = vld [vmem:[#allocation2 + $0x7f8] sm:$0xff]  ;;  %v616_v9 = vld [vmem:[#allocation2 + $0x7e0] sm:$0xff] }
  0xeb   : > { %764 = vmatprep.subr.mxu1 %v481_v10  ;;  %826 = vmatprep.mubr.f32.mxu1 %v361_v7  ;;  %v618_v10 = vld [vmem:[#allocation2 + $0x7f0] sm:$0xff] }
  0xec   : > { %835 = vmatprep.subr.mxu0 %v483_v11  ;;  %897 = vmatprep.mubr.f32.mxu0 %v361_v7  ;;  %v617_v7 = vld [vmem:[#allocation2 + $0x7e8] sm:$0xff] }
  0xed   : > { %765 = vmatpush1.msra.mxu1 %v480_v12  ;;  %836 = vmatpush1.msra.mxu0 %v482_v13  ;;  %v609_v11 = vld [vmem:[#allocation2 + $0x7a8] sm:$0xff]  ;;  %v611_v12 = vld [vmem:[#allocation2 + $0x7b8] sm:$0xff]  ;;  %v608_v13 = vld [vmem:[#allocation2 + $0x7a0] sm:$0xff] }
  0xee   : > { %766 = vmatprep.subr.mxu1 %v473_v14  ;;  %837 = vmatprep.subr.mxu0 %v475_v15  ;;  %v610_v14 = vld [vmem:[#allocation2 + $0x7b0] sm:$0xff]  ;;  %v601_v15 = vld [vmem:[#allocation2 + $0x768] sm:$0xff] }
  0xef   : > { %767 = vmatpush1.msra.mxu1 %v472_v16  ;;  %838 = vmatpush1.msra.mxu0 %v474_v17  ;;  %v603_v16 = vld [vmem:[#allocation2 + $0x778] sm:$0xff]  ;;  %v600_v17 = vld [vmem:[#allocation2 + $0x760] sm:$0xff] }
  0xf0   : > { %768 = vmatprep.subr.mxu1 %v465_v18  ;;  %839 = vmatprep.subr.mxu0 %v467_v19  ;;  %v602_v18 = vld [vmem:[#allocation2 + $0x770] sm:$0xff]  ;;  %v593_v19 = vld [vmem:[#allocation2 + $0x728] sm:$0xff] }
  0xf1   : > { %769 = vmatpush1.msra.mxu1 %v464_v20  ;;  %840 = vmatpush1.msra.mxu0 %v466_v21  ;;  %v595_v20 = vld [vmem:[#allocation2 + $0x738] sm:$0xff]  ;;  %v592_v21 = vld [vmem:[#allocation2 + $0x720] sm:$0xff] }
  0xf2   : > { %770 = vmatprep.subr.mxu1 %v457_v22  ;;  %841 = vmatprep.subr.mxu0 %v459_v23  ;;  %v594_v22 = vld [vmem:[#allocation2 + $0x730] sm:$0xff]  ;;  %v585_v23 = vld [vmem:[#allocation2 + $0x6e8] sm:$0xff] }
  0xf3   : > { %771 = vmatpush1.msra.mxu1 %v456_v24  ;;  %842 = vmatpush1.msra.mxu0 %v458_v25  ;;  %v587_v24 = vld [vmem:[#allocation2 + $0x6f8] sm:$0xff]  ;;  %v584_v25 = vld [vmem:[#allocation2 + $0x6e0] sm:$0xff] }
  0xf4   : > { %772 = vmatprep.subr.mxu1 %v449_v26  ;;  %843 = vmatprep.subr.mxu0 %v451_v27  ;;  %v586_v26 = vld [vmem:[#allocation2 + $0x6f0] sm:$0xff]  ;;  %v577_v27 = vld [vmem:[#allocation2 + $0x6a8] sm:$0xff] }
  0xf5   : > { %773 = vmatpush1.msra.mxu1 %v448_v28  ;;  %844 = vmatpush1.msra.mxu0 %v450_v29  ;;  %v579_v28 = vld [vmem:[#allocation2 + $0x6b8] sm:$0xff]  ;;  %v576_v29 = vld [vmem:[#allocation2 + $0x6a0] sm:$0xff] }
  0xf6   : > { %774 = vmatprep.subr.mxu1 %v441_v30  ;;  %845 = vmatprep.subr.mxu0 %v443_v31  ;;  %v578_v30 = vld [vmem:[#allocation2 + $0x6b0] sm:$0xff]  ;;  %v569_v31 = vld [vmem:[#allocation2 + $0x668] sm:$0xff] }
  0xf7   : > { %775 = vmatpush1.msra.mxu1 %v440_v32  ;;  %846 = vmatpush1.msra.mxu0 %v442_v33  ;;  %v571_v32 = vld [vmem:[#allocation2 + $0x678] sm:$0xff]  ;;  %v568_v33 = vld [vmem:[#allocation2 + $0x660] sm:$0xff] }
  0xf8   : > { %776 = vmatprep.subr.mxu1 %v433_v34  ;;  %847 = vmatprep.subr.mxu0 %v435_v35  ;;  %v570_v34 = vld [vmem:[#allocation2 + $0x670] sm:$0xff]  ;;  %v561_v35 = vld [vmem:[#allocation2 + $0x628] sm:$0xff] }
  0xf9   : > { %777 = vmatpush1.msra.mxu1 %v432_v36  ;;  %848 = vmatpush1.msra.mxu0 %v434_v37  ;;  %v563_v36 = vld [vmem:[#allocation2 + $0x638] sm:$0xff]  ;;  %v560_v37 = vld [vmem:[#allocation2 + $0x620] sm:$0xff] }
  0xfa   : > { %778 = vmatprep.subr.mxu1 %v425_v38  ;;  %849 = vmatprep.subr.mxu0 %v427_v39  ;;  %v562_v38 = vld [vmem:[#allocation2 + $0x630] sm:$0xff]  ;;  %v553_v39 = vld [vmem:[#allocation2 + $0x5e8] sm:$0xff] }
  0xfb   : > { %779 = vmatpush1.msra.mxu1 %v424_v40  ;;  %850 = vmatpush1.msra.mxu0 %v426_v41  ;;  %v555_v40 = vld [vmem:[#allocation2 + $0x5f8] sm:$0xff]  ;;  %v552_v41 = vld [vmem:[#allocation2 + $0x5e0] sm:$0xff] }
  0xfc   : > { %780 = vmatprep.subr.mxu1 %v417_v42  ;;  %851 = vmatprep.subr.mxu0 %v419_v43  ;;  %v554_v42 = vld [vmem:[#allocation2 + $0x5f0] sm:$0xff]  ;;  %v545_v43 = vld [vmem:[#allocation2 + $0x5a8] sm:$0xff] }
  0xfd   : > { %781 = vmatpush1.msra.mxu1 %v416_v44  ;;  %852 = vmatpush1.msra.mxu0 %v418_v45  ;;  %v547_v44 = vld [vmem:[#allocation2 + $0x5b8] sm:$0xff]  ;;  %v544_v45 = vld [vmem:[#allocation2 + $0x5a0] sm:$0xff] }
  0xfe   : > { %782 = vmatprep.subr.mxu1 %v409_v46  ;;  %853 = vmatprep.subr.mxu0 %v411_v47  ;;  %v546_v46 = vld [vmem:[#allocation2 + $0x5b0] sm:$0xff]  ;;  %v537_v47 = vld [vmem:[#allocation2 + $0x568] sm:$0xff] }
  0xff   : > { %783 = vmatpush1.msra.mxu1 %v408_v48  ;;  %854 = vmatpush1.msra.mxu0 %v410_v49  ;;  %v539_v48 = vld [vmem:[#allocation2 + $0x578] sm:$0xff]  ;;  %v536_v49 = vld [vmem:[#allocation2 + $0x560] sm:$0xff] }
 0x100   : > { %784 = vmatprep.subr.mxu1 %v401_v50  ;;  %855 = vmatprep.subr.mxu0 %v403_v51  ;;  %v538_v50 = vld [vmem:[#allocation2 + $0x570] sm:$0xff]  ;;  %v529_v51 = vld [vmem:[#allocation2 + $0x528] sm:$0xff] }
 0x101   : > { %785 = vmatpush1.msra.mxu1 %v400_v52  ;;  %856 = vmatpush1.msra.mxu0 %v402_v53  ;;  %v531_v52 = vld [vmem:[#allocation2 + $0x538] sm:$0xff]  ;;  %v528_v53 = vld [vmem:[#allocation2 + $0x520] sm:$0xff] }
 0x102   : > { %786 = vmatprep.subr.mxu1 %v393_v54  ;;  %857 = vmatprep.subr.mxu0 %v395_v55  ;;  %v530_v54 = vld [vmem:[#allocation2 + $0x530] sm:$0xff]  ;;  %v521_v55 = vld [vmem:[#allocation2 + $0x4e8] sm:$0xff] }
 0x103   : > { %787 = vmatpush1.msra.mxu1 %v392_v56  ;;  %858 = vmatpush1.msra.mxu0 %v394_v57  ;;  %v523_v56 = vld [vmem:[#allocation2 + $0x4f8] sm:$0xff]  ;;  %v520_v57 = vld [vmem:[#allocation2 + $0x4e0] sm:$0xff] }
 0x104   : > { %788 = vmatprep.subr.mxu1 %v385_v58  ;;  %859 = vmatprep.subr.mxu0 %v387_v59  ;;  %v522_v58 = vld [vmem:[#allocation2 + $0x4f0] sm:$0xff]  ;;  %v513_v59 = vld [vmem:[#allocation2 + $0x4a8] sm:$0xff] }
 0x105   : > { %789 = vmatpush1.msra.mxu1 %v384_v60  ;;  %860 = vmatpush1.msra.mxu0 %v386_v61  ;;  %v515_v60 = vld [vmem:[#allocation2 + $0x4b8] sm:$0xff]  ;;  %v512_v61 = vld [vmem:[#allocation2 + $0x4a0] sm:$0xff] }
 0x106   : > { %790 = vmatprep.subr.mxu1 %v377_v62  ;;  %861 = vmatprep.subr.mxu0 %v379_v63  ;;  %v514_v62 = vld [vmem:[#allocation2 + $0x4b0] sm:$0xff]  ;;  %v505_v63 = vld [vmem:[#allocation2 + $0x468] sm:$0xff] }
 0x107   : > { %791 = vmatpush1.msra.mxu1 %v376_v0  ;;  %862 = vmatpush1.msra.mxu0 %v378_v1  ;;  %v507_v0 = vld [vmem:[#allocation2 + $0x478] sm:$0xff]  ;;  %v504_v1 = vld [vmem:[#allocation2 + $0x460] sm:$0xff] }
 0x108   : > { %792 = vmatprep.subr.mxu1 %v369_v2  ;;  %863 = vmatprep.subr.mxu0 %v371_v3  ;;  %v506_v2 = vld [vmem:[#allocation2 + $0x470] sm:$0xff]  ;;  %v497_v3 = vld [vmem:[#allocation2 + $0x428] sm:$0xff] }
 0x109   : > { %793 = vmatpush1.msra.mxu1 %v368_v4  ;;  %864 = vmatpush1.msra.mxu0 %v370_v5  ;;  %v499_v4 = vld [vmem:[#allocation2 + $0x438] sm:$0xff]  ;;  %v496_v5 = vld [vmem:[#allocation2 + $0x420] sm:$0xff] }
 0x10a   : > { %794 = vmatprep.subr.mxu1 %v617_v7  ;;  %865 = vmatprep.subr.mxu0 %v619_v8  ;;  %v498_v7 = vld [vmem:[#allocation2 + $0x430] sm:$0xff] }
 0x10b   : > { %795 = vmatpush2.msra.mxu1 %v616_v9  ;;  %866 = vmatpush2.msra.mxu0 %v618_v10 }
 0x10c   : > { %796 = vmatprep.subr.mxu1 %v609_v11  ;;  %867 = vmatprep.subr.mxu0 %v611_v12 }
 0x10d   : > { %797 = vmatpush2.msra.mxu1 %v608_v13  ;;  %868 = vmatpush2.msra.mxu0 %v610_v14 }
 0x10e   : > { %798 = vmatprep.subr.mxu1 %v601_v15  ;;  %869 = vmatprep.subr.mxu0 %v603_v16 }
 0x10f   : > { %799 = vmatpush2.msra.mxu1 %v600_v17  ;;  %870 = vmatpush2.msra.mxu0 %v602_v18 }
 0x110   : > { %800 = vmatprep.subr.mxu1 %v593_v19  ;;  %871 = vmatprep.subr.mxu0 %v595_v20 }
 0x111   : > { %801 = vmatpush2.msra.mxu1 %v592_v21  ;;  %872 = vmatpush2.msra.mxu0 %v594_v22 }
 0x112   : > { %802 = vmatprep.subr.mxu1 %v585_v23  ;;  %873 = vmatprep.subr.mxu0 %v587_v24 }
 0x113   : > { %803 = vmatpush2.msra.mxu1 %v584_v25  ;;  %874 = vmatpush2.msra.mxu0 %v586_v26 }
 0x114   : > { %804 = vmatprep.subr.mxu1 %v577_v27  ;;  %875 = vmatprep.subr.mxu0 %v579_v28 }
 0x115   : > { %805 = vmatpush2.msra.mxu1 %v576_v29  ;;  %876 = vmatpush2.msra.mxu0 %v578_v30 }
 0x116   : > { %806 = vmatprep.subr.mxu1 %v569_v31  ;;  %877 = vmatprep.subr.mxu0 %v571_v32 }
 0x117   : > { %807 = vmatpush2.msra.mxu1 %v568_v33  ;;  %878 = vmatpush2.msra.mxu0 %v570_v34 }
 0x118   : > { %808 = vmatprep.subr.mxu1 %v561_v35  ;;  %879 = vmatprep.subr.mxu0 %v563_v36 }
 0x119   : > { %809 = vmatpush2.msra.mxu1 %v560_v37  ;;  %880 = vmatpush2.msra.mxu0 %v562_v38 }
 0x11a   : > { %810 = vmatprep.subr.mxu1 %v553_v39  ;;  %881 = vmatprep.subr.mxu0 %v555_v40 }
 0x11b   : > { %811 = vmatpush2.msra.mxu1 %v552_v41  ;;  %882 = vmatpush2.msra.mxu0 %v554_v42 }
 0x11c   : > { %812 = vmatprep.subr.mxu1 %v545_v43  ;;  %883 = vmatprep.subr.mxu0 %v547_v44 }
 0x11d   : > { %813 = vmatpush2.msra.mxu1 %v544_v45  ;;  %884 = vmatpush2.msra.mxu0 %v546_v46 }
 0x11e   : > { %814 = vmatprep.subr.mxu1 %v537_v47  ;;  %885 = vmatprep.subr.mxu0 %v539_v48 }
 0x11f   : > { %815 = vmatpush2.msra.mxu1 %v536_v49  ;;  %886 = vmatpush2.msra.mxu0 %v538_v50 }
 0x120   : > { %816 = vmatprep.subr.mxu1 %v529_v51  ;;  %887 = vmatprep.subr.mxu0 %v531_v52 }
 0x121   : > { %817 = vmatpush2.msra.mxu1 %v528_v53  ;;  %888 = vmatpush2.msra.mxu0 %v530_v54 }
 0x122   : > { %818 = vmatprep.subr.mxu1 %v521_v55  ;;  %889 = vmatprep.subr.mxu0 %v523_v56 }
 0x123   : > { %819 = vmatpush2.msra.mxu1 %v520_v57  ;;  %890 = vmatpush2.msra.mxu0 %v522_v58 }
 0x124   : > { %820 = vmatprep.subr.mxu1 %v513_v59  ;;  %891 = vmatprep.subr.mxu0 %v515_v60 }
 0x125   : > { %821 = vmatpush2.msra.mxu1 %v512_v61  ;;  %892 = vmatpush2.msra.mxu0 %v514_v62 }
 0x126   : > { %822 = vmatprep.subr.mxu1 %v505_v63  ;;  %893 = vmatprep.subr.mxu0 %v507_v0 }
 0x127   : > { %823 = vmatpush2.msra.mxu1 %v504_v1  ;;  %894 = vmatpush2.msra.mxu0 %v506_v2  ;;  %v968_v2 = vld [vmem:[%s276_s12] sm:$0xff] }
 0x128   : > { %824 = vmatprep.subr.mxu1 %v497_v3  ;;  %895 = vmatprep.subr.mxu0 %v499_v4  ;;  %v969_v3 = vld [vmem:[%s276_s12 + $0x8] sm:$0xff]  ;;  %v970_v4 = vld [vmem:[%s276_s12 + $0x10] sm:$0xff] }
 0x129   : > { %825 = vmatpush2.msra.mxu1 %v496_v5  ;;  %896 = vmatpush2.msra.mxu0 %v498_v7  ;;  %v971_v5 = vld [vmem:[%s276_s12 + $0x18] sm:$0xff]  ;;  %v976_v7 = vcombine.high %v968_v2, %v968_v2 }
 0x12a   : > { %827 = vmatmul.mubr.f32.vlgmr.msra.gmra.mxu1 %v1344_v6  ;;  %898 = vmatmul.mubr.f32.vlgmr.msra.gmra.mxu0 %v1344_v6 }
 0x1a9   : > { %v686_v8 = vpop.f32.mrf.mxu1  ;;  %v757_v12 = vpop.f32.mrf.mxu0 }
 0x1aa   : > { %v905_v11 = vsel %vm904_vm1, %v686_v8, 0.0  ;;  %v908_v14 = vsel %vm904_vm1, %v757_v12, 0.0 }
 0x1ab   : > { %v688_v9 = vpop.f32.mrf.mxu1  ;;  %v759_v15 = vpop.f32.mrf.mxu0 }
 0x1ac   : > { %v906_v10 = vsel %vm904_vm1, %v688_v9, 0.0  ;;  %v910_v17 = vsel %vm904_vm1, %v759_v15, 0.0 }
 0x1ad   : > { %v907_v13 = vadd.f32 %v906_v10, %v905_v11  ;;  %v978_v10 = vcombine.high %v970_v4, %v970_v4  ;;  %v979_v11 = vcombine.high %v971_v5, %v971_v5 }
 0x1af   : > { %v909_v16 = vadd.f32 %v908_v14, %v907_v13 }
 0x1b1   : > { %v911_v18 = vadd.f32 %v910_v17, %v909_v16 }
 0x1ea   : > { %v828_v19 = vpop.f32.mrf.mxu1  ;;  %v899_v20 = vpop.f32.mrf.mxu0 }
 0x1eb   : > { %v912_v6 = vsel %vm904_vm1, %v828_v19, 0.0  ;;  %v916_v26 = vsel %vm904_vm1, %v899_v20, 0.0 }
 0x1ec   : > { %v913_v21 = vadd.f32 %v912_v6, %v911_v18  ;;  %v830_v22 = vpop.f32.mrf.mxu1  ;;  %v901_v25 = vpop.f32.mrf.mxu0 }
 0x1ed   : > { %v914_v23 = vsel %vm904_vm1, %v830_v22, 0.0  ;;  %v918_v28 = vsel %vm904_vm1, %v901_v25, 0.0 }
 0x1ee   : > { %v915_v24 = vadd.f32 %v914_v23, %v913_v21 }
 0x1f0   : > { %v917_v27 = vadd.f32 %v916_v26, %v915_v24 }
 0x1f2   : > { %v919_v29 = vadd.f32 %v918_v28, %v917_v27 }
 0x1f4   : > { %920 = vadd.xlane.f32.xlu0 %v919_v29 }
 0x27d   : > { %v921_v30 = vpop.xlane.xlu0 %920 }
 0x27e   : > { %v923_v31 = vmul.f32 0.0009765625, %v921_v30 }
 0x280   : > { %v924_v32 = vsub.f32 %v686_v8, %v923_v31  ;;  %v925_v33 = vsub.f32 %v688_v9, %v923_v31  ;;  %v926_v34 = vsub.f32 %v757_v12, %v923_v31  ;;  %v927_v35 = vsub.f32 %v759_v15, %v923_v31 }
 0x281   : > { %v928_v36 = vsub.f32 %v828_v19, %v923_v31  ;;  %v929_v40 = vsub.f32 %v830_v22, %v923_v31  ;;  %v930_v45 = vsub.f32 %v899_v20, %v923_v31  ;;  %v931_v49 = vsub.f32 %v901_v25, %v923_v31 }
 0x282   : > { %v932_v37 = vmul.f32 %v924_v32, %v924_v32  ;;  %v933_v38 = vmul.f32 %v925_v33, %v925_v33  ;;  %v934_v39 = vmul.f32 %v926_v34, %v926_v34  ;;  %v935_v41 = vmul.f32 %v927_v35, %v927_v35 }
 0x283   : > { %v936_v46 = vmul.f32 %v928_v36, %v928_v36  ;;  %v937_v50 = vmul.f32 %v929_v40, %v929_v40  ;;  %v938_v53 = vmul.f32 %v930_v45, %v930_v45  ;;  %v939_v56 = vmul.f32 %v931_v49, %v931_v49 }
 0x284   : > { %v940_v42 = vsel %vm904_vm1, %v932_v37, 0.0  ;;  %v941_v43 = vsel %vm904_vm1, %v933_v38, 0.0  ;;  %v943_v47 = vsel %vm904_vm1, %v934_v39, 0.0  ;;  %v945_v51 = vsel %vm904_vm1, %v935_v41, 0.0 }
 0x285   : > { %v942_v44 = vadd.f32 %v941_v43, %v940_v42  ;;  %v947_v54 = vsel %vm904_vm1, %v936_v46, 0.0  ;;  %v949_v57 = vsel %vm904_vm1, %v937_v50, 0.0  ;;  %v951_v59 = vsel %vm904_vm1, %v938_v53, 0.0 }
 0x286   : > { %v953_v61 = vsel %vm904_vm1, %v939_v56, 0.0  ;;  %v977_v8 = vcombine.high %v969_v3, %v969_v3 }
 0x287   : > { %v944_v48 = vadd.f32 %v943_v47, %v942_v44 }
 0x289   : > { %v946_v52 = vadd.f32 %v945_v51, %v944_v48 }
 0x28b   : > { %v948_v55 = vadd.f32 %v947_v54, %v946_v52 }
 0x28d   : > { %v950_v58 = vadd.f32 %v949_v57, %v948_v55 }
 0x28f   : > { %v952_v60 = vadd.f32 %v951_v59, %v950_v58 }
 0x291   : > { %v954_v62 = vadd.f32 %v953_v61, %v952_v60 }
 0x293   : > { %955 = vadd.xlane.f32.xlu0 %v954_v62 }
 0x31c   : > { %v956_v63 = vpop.xlane.xlu0 %955 }
 0x31d   : > { %v957_v0 = vmul.f32 0.0009765625, %v956_v63 }
 0x31f   : > { %v958_v1 = vadd.f32 1e-05, %v957_v0 }
 0x321   : > { %1206 = vrsqrt.f32 %v958_v1 }
 0x32e   : > { %v1207_v9 = vpop.eup %1206 }
 0x32f   : > { %v960_v12 = vmul.f32 %v1207_v9, %v924_v32  ;;  %v961_v13 = vmul.f32 %v1207_v9, %v925_v33  ;;  %v962_v14 = vmul.f32 %v1207_v9, %v926_v34  ;;  %v963_v15 = vmul.f32 %v1207_v9, %v927_v35 }
 0x330   : > { %v964_v16 = vmul.f32 %v1207_v9, %v928_v36  ;;  %v965_v17 = vmul.f32 %v1207_v9, %v929_v40  ;;  %v966_v18 = vmul.f32 %v1207_v9, %v930_v45  ;;  %v967_v19 = vmul.f32 %v1207_v9, %v931_v49 }
 0x331   : > { %v984_v20 = vadd.f32 %v968_v2, %v960_v12  ;;  %v985_v6 = vadd.f32 %v976_v7, %v961_v13  ;;  %v986_v21 = vadd.f32 %v969_v3, %v962_v14  ;;  %v987_v22 = vadd.f32 %v977_v8, %v963_v15 }
 0x332   : > { %v988_v23 = vadd.f32 %v970_v4, %v964_v16  ;;  %v989_v24 = vadd.f32 %v978_v10, %v965_v17  ;;  %v990_v25 = vadd.f32 %v971_v5, %v966_v18  ;;  %v991_v26 = vadd.f32 %v979_v11, %v967_v19 }
 0x333   : > { %v1000_v27 = vcombine.low %v984_v20, %v985_v6  ;;  %v1001_v28 = vcombine.low %v986_v21, %v987_v22 }
 0x334   : > { %v1002_v29 = vcombine.low %v988_v23, %v989_v24  ;;  %v1003_v30 = vcombine.low %v990_v25, %v991_v26 }
 0x335   : > { %1008 = vst [vmem:[%s285_s15] sm:$0xff] %v1000_v27  ;;  %1009 = vst [vmem:[%s285_s15 + $0x8] sm:$0xff] %v1001_v28 }
 0x336   : > { %1010 = vst [vmem:[%s285_s15 + $0x10] sm:$0xff] %v1002_v29  ;;  %1011 = vst [vmem:[%s285_s15 + $0x18] sm:$0xff] %v1003_v30 }
 0x337 PF: > { %s15_s17 = sadd.s32 1, %s1260_s17   ;;  %s1389_s15 = smov %s1256_s16 }
 0x338   : > { %p12_p2 = scmp.ge.s32.totalorder %s15_s17, 4   ;;  %s1390_s16 = smov %s1392_s19 }
 0x33a   :  { %14 = sbr.rel (!%p12_p2) target bundleno = 2 (0x2), region = 77 }
 0x33f   :  { %1041 = vsyncpa [#allocation3], 1 }
 0x340   :  { %1043 = vsyncpa [#allocation3 + $0x1], 1 }

</bundles_post_ra>
